<compile_context>
chip_gen: v7x
topology: tpu7x:2x2x1
jax: 0.10.0
libtpu: 0.0.40
codegen_flags: <defaults>
</compile_context>

<pallas_src>
import functools
import math

import jax
import jax.numpy as jnp
from jax.experimental import pallas as pl
from jax.experimental.pallas import tpu as pltpu


# ---------------------------------------------------------------------------
# Small helpers
# ---------------------------------------------------------------------------
def _slab_rows(ntaps, c):
    """Rows of the tap slab when taps are grouped so every store chunk is a
    multiple of 8 sublanes (only the last, possibly partial, group is padded)."""
    g = 8 // math.gcd(8, c)                  # taps per aligned store group
    full = (ntaps // g) * g * c
    rem = (ntaps % g) * c
    return full + (((rem + 7) // 8) * 8 if rem else 0)


def _erf_poly(x):
    # Abramowitz & Stegun 7.1.26 rational approximation (|err| <= 1.5e-7),
    # fallback when jax.lax.erf does not lower in this Mosaic build.
    a1, a2, a3, a4, a5 = (0.254829592, -0.284496736, 1.421413741,
                          -1.453152027, 1.061405429)
    p = 0.3275911
    s = jnp.sign(x)
    z = jnp.abs(x)
    # approx=False: keep the ~1.5e-7 fit accuracy (approx=True would inject
    # ~1e-3-level error into the erf tail and break the 1e-4 tolerance).
    t = pl.reciprocal(1.0 + p * z, approx=False)
    poly = ((((a5 * t + a4) * t + a3) * t + a2) * t + a1) * t
    return s * (1.0 - poly * jnp.exp(-z * z))


def _gelu(x, native_erf):
    # PyTorch nn.GELU() default ('none'): 0.5 * x * (1 + erf(x / sqrt(2)))
    u = x * 0.7071067811865475
    e = jax.lax.erf(u) if native_erf else _erf_poly(u)
    return 0.5 * x * (1.0 + e)


def _layernorm_channels(x, gamma, beta, eps=1e-5):
    # x: (C, N) -- per-pixel LayerNorm over the channel (sublane) axis,
    # biased variance, affine.  gamma/beta: (C, 1) (lane-broadcast).
    mu = jnp.mean(x, axis=0, keepdims=True)
    xc = x - mu
    var = jnp.mean(xc * xc, axis=0, keepdims=True)
    return xc * jax.lax.rsqrt(var + eps) * gamma + beta


# ---------------------------------------------------------------------------
# One-time hardware probes (cached): pltpu.roll direction convention, and
# whether jax.lax.erf lowers natively (EUP path) in this Mosaic build.
# ---------------------------------------------------------------------------
_ROLL_FORWARD = None
_NATIVE_ERF = None


def _roll_moves_to_higher_indices() -> bool:
    global _ROLL_FORWARD
    if _ROLL_FORWARD is None:
        def probe(x_ref, o_ref):
            o_ref[...] = pltpu.roll(x_ref[...], shift=1, axis=1)

        x = jnp.tile(jnp.arange(128, dtype=jnp.float32)[None, :], (8, 1))
        y = pl.pallas_call(
            probe, out_shape=jax.ShapeDtypeStruct((8, 128), jnp.float32))(x)
        _ROLL_FORWARD = bool(float(y[0, 1]) == 0.0)
    return _ROLL_FORWARD


def _native_erf_available() -> bool:
    global _NATIVE_ERF
    if _NATIVE_ERF is None:
        def probe(x_ref, o_ref):
            o_ref[...] = jax.lax.erf(x_ref[...])

        try:
            x = jnp.ones((8, 128), jnp.float32)
            y = pl.pallas_call(
                probe, out_shape=jax.ShapeDtypeStruct((8, 128), jnp.float32))(x)
            _NATIVE_ERF = bool(abs(float(y[0, 0]) - 0.8427007929) < 1e-3)
        except Exception:
            _NATIVE_ERF = False
    return _NATIVE_ERF


# ---------------------------------------------------------------------------
# Pallas kernel: one packed group of batch images per grid step, fully fused.
# ---------------------------------------------------------------------------
def res_conv_block_kernel(x_ref, w1_ref, w2_ref, pcol_ref, coords_ref,
                          o_ref, slab_ref, *,
                          K, pad, H, W, roll_forward, fold_residual, native_erf):
    N = x_ref.shape[2]                       # packed lane axis (Bt * H * W)
    x = x_ref[0]                             # (Cin, N) float32
    cin = x.shape[0]
    cout = o_ref.shape[1]
    mm_dt = slab_ref.dtype

    ii = coords_ref[0:1, :]                  # (1, N) int32: row index in image
    jj = coords_ref[1:2, :]                  # (1, N) int32: col index in image

    gelu = functools.partial(_gelu, native_erf=native_erf)

    def tap(src, dy, dx):
        # Lane q = b*H*W + i*W + j of the result holds src[:, b*H*W + (i+dy)*W
        # + (j+dx)] and 0 where that tap lands in the zero-padding halo.  The
        # flat lane-roll is exact for every in-bounds tap; every out-of-bounds
        # lane (row wrap, image-seam wrap from lane-packed batches, halo) is
        # exactly a lane the border compares zero, so no physical padding is
        # ever materialized in HBM or VMEM.
        s = dy * W + dx
        if s == 0:
            return src
        shift = (-s) % N if roll_forward else s % N
        rolled = pltpu.roll(src, shift=shift, axis=1)
        conds = []
        if dy > 0:
            conds.append(ii < H - dy)
        if dy < 0:
            conds.append(ii >= -dy)
        if dx > 0:
            conds.append(jj < W - dx)
        if dx < 0:
            conds.append(jj >= -dx)
        ok = conds[0]
        for c in conds[1:]:
            ok = ok & c
        return jnp.where(ok, rolled, 0.0)

    def build_slab(src, c):
        # Stack the K*K shifted/masked taps into the (rows, N) VMEM slab so one
        # conv is ONE MXU matmul.  Taps are grouped so every store chunk is a
        # multiple of 8 sublanes: full-tile vst instead of masked RMW stores.
        taps = [(kh - pad, kw - pad) for kh in range(K) for kw in range(K)]
        g = 8 // math.gcd(8, c)
        row = 0
        for t0 in range(0, len(taps), g):
            grp = taps[t0:t0 + g]
            parts = [tap(src, dy, dx) for dy, dx in grp]
            rows = len(grp) * c
            padr = (-rows) % 8
            if padr:
                parts.append(jnp.zeros((padr, N), jnp.float32))
            block = parts[0] if len(parts) == 1 else jnp.concatenate(parts, axis=0)
            slab_ref[row:row + rows + padr, :] = block.astype(mm_dt)
            row += rows + padr
        return row

    # packed per-channel parameter columns: (Cout, 1) each
    b1, g1, be1 = pcol_ref[:, 0:1], pcol_ref[:, 1:2], pcol_ref[:, 2:3]
    b2, g2, be2 = pcol_ref[:, 3:4], pcol_ref[:, 4:5], pcol_ref[:, 5:6]
    b_res = pcol_ref[:, 6:7]

    # conv1 (with the 1x1 residual conv folded into extra weight rows): one
    # MXU matmul over the x-tap slab.
    rows1 = build_slab(x, cin)
    y = jnp.dot(w1_ref[...], slab_ref[0:rows1, :],
                preferred_element_type=jnp.float32)
    if fold_residual:
        y1 = y[0:cout] + b1
        r = y[cout:2 * cout] + b_res
    else:
        y1 = y + b1
        r = x                                # identity residual: exact f32, no matmul

    h = gelu(_layernorm_channels(y1, g1, be1))

    # conv2: one MXU matmul over the h-tap slab (reuses the same scratch)
    rows2 = build_slab(h, cout)
    y2 = jnp.dot(w2_ref[...], slab_ref[0:rows2, :],
                 preferred_element_type=jnp.float32) + b2
    z = _layernorm_channels(y2, g2, be2)

    o_ref[0] = gelu(z + r).astype(o_ref.dtype)


# ---------------------------------------------------------------------------
# Wrapper (takes / returns NCHW, like the PyTorch module)
# ---------------------------------------------------------------------------
def res_conv_block(x_nchw, params, *, kernel_size, stride, padding,
                   matmul_dtype=jnp.float32):
    B, Cin, H, W = x_nchw.shape
    K, p = kernel_size, padding
    assert stride == 1 and 2 * p == K - 1, \
        "residual add requires shape-preserving convolutions (stride=1, same padding)"
    Cout = params["w1"].shape[0]
    HW = H * W
    has_res = "w_res" in params
    if not has_res:
        assert Cin == Cout, "identity residual requires in_channels == out_channels"
    itemsize = jnp.dtype(matmul_dtype).itemsize

    slab1_rows = _slab_rows(K * K, Cin)
    slab2_rows = _slab_rows(K * K, Cout)
    slab_rows = max(slab1_rows, slab2_rows)

    # Lane-axis batch packing: widen the lane axis for small images so the
    # per-grid-step overhead and the fixed slab-build cost amortize; capped so
    # the slab scratch stays well inside VMEM.
    target_lanes, slab_budget = 2048, 8 << 20
    Bt = max(1, min(B, target_lanes // max(HW, 1)))
    while Bt > 1 and (B % Bt != 0 or slab_rows * Bt * HW * itemsize > slab_budget):
        Bt -= 1
    G = B // Bt
    N = Bt * HW

    # Weights as (rows, slab_rows) matmul matrices, tap-major / channel-minor,
    # zero-padded on the right to the 8-aligned slab row count.
    def to_mat(w):  # (Cout, C, K, K) -> (Cout, K*K*C)
        return jnp.transpose(w, (0, 2, 3, 1)).reshape(w.shape[0], -1)

    w1_mat = to_mat(params["w1"])
    if slab1_rows > w1_mat.shape[1]:
        w1_mat = jnp.concatenate(
            [w1_mat, jnp.zeros((Cout, slab1_rows - w1_mat.shape[1]),
                               w1_mat.dtype)], axis=1)
    if has_res:
        # Fold the 1x1 residual conv into the conv1 matmul: its weights sit at
        # the centre-tap columns, so rows [Cout:2*Cout) of the result are r.
        tc = p * K + p
        wres_cols = jnp.zeros((Cout, slab1_rows), jnp.float32)
        wres_cols = wres_cols.at[:, tc * Cin:tc * Cin + Cin].set(params["w_res"])
        w1_mat = jnp.concatenate([w1_mat, wres_cols], axis=0)   # (2*Cout, rows1)
        b_res = params["b_res"]
    else:
        b_res = jnp.zeros((Cout,), jnp.float32)

    w2_mat = to_mat(params["w2"])
    if slab2_rows > w2_mat.shape[1]:
        w2_mat = jnp.concatenate(
            [w2_mat, jnp.zeros((Cout, slab2_rows - w2_mat.shape[1]),
                               w2_mat.dtype)], axis=1)

    w1_mat = w1_mat.astype(matmul_dtype)
    w2_mat = w2_mat.astype(matmul_dtype)
    assert w1_mat.shape[1] == slab1_rows and w2_mat.shape[1] == slab2_rows

    # Seven per-channel vectors packed into one (Cout, 8) block (one DMA).
    pcol = jnp.stack([params["b1"], params["g1"], params["be1"],
                      params["b2"], params["g2"], params["be2"],
                      b_res, jnp.zeros((Cout,), jnp.float32)],
                     axis=1).astype(jnp.float32)

    # Per-lane (row, col) coordinates within each packed image; the kernel
    # builds every tap's border mask from these with two int compares (no
    # (K*K, HW) f32 mask stream from HBM).
    ii, jj = jnp.meshgrid(jnp.arange(H, dtype=jnp.int32),
                          jnp.arange(W, dtype=jnp.int32), indexing="ij")
    coords = jnp.tile(jnp.stack([ii.reshape(HW), jj.reshape(HW)], axis=0),
                      (1, Bt))                                    # (2, N)

    # Pack Bt batch images onto the lane axis (free reshape when Bt == 1;
    # layout plumbing only done for small images where the copy is tiny).
    if Bt > 1:
        x_pack = (x_nchw.reshape(G, Bt, Cin, HW)
                  .transpose(0, 2, 1, 3).reshape(G, Cin, N))
    else:
        x_pack = x_nchw.reshape(B, Cin, HW)

    # VMEM budget: double-buffered in/out blocks + weights + slab scratch.
    vmem_bytes = (2 * (Cin + Cout) * N * 4
                  + 2 * (w1_mat.size + w2_mat.size) * itemsize
                  + 2 * (pcol.size + coords.size) * 4
                  + slab_rows * N * itemsize)
    vmem_bytes = min(max(int(vmem_bytes * 1.5) + (2 << 20), 4 << 20), 128 << 20)

    flops = (2 * G * N * (w1_mat.shape[0] * slab1_rows + Cout * slab2_rows)
             + 60 * B * Cout * HW)
    transcendentals = 2 * B * Cout * HW + 2 * B * HW
    bytes_accessed = ((x_pack.size + G * Cout * N) * 4
                      + (w1_mat.size + w2_mat.size) * itemsize
                      + (pcol.size + coords.size) * 4)

    kernel = functools.partial(
        res_conv_block_kernel, K=K, pad=p, H=H, W=W,
        roll_forward=_roll_moves_to_higher_indices(),
        fold_residual=has_res,
        native_erf=_native_erf_available())

    out_flat = pl.pallas_call(
        kernel,
        out_shape=jax.ShapeDtypeStruct((G, Cout, N), jnp.float32),
        grid=(G,),
        in_specs=[
            pl.BlockSpec((1, Cin, N), lambda g: (g, 0, 0)),       # packed x
            pl.BlockSpec(w1_mat.shape, lambda g: (0, 0)),         # conv1 (+res)
            pl.BlockSpec(w2_mat.shape, lambda g: (0, 0)),         # conv2
            pl.BlockSpec((Cout, 8), lambda g: (0, 0)),            # packed vecs
            pl.BlockSpec((2, N), lambda g: (0, 0)),               # lane coords
        ],
        out_specs=pl.BlockSpec((1, Cout, N), lambda g: (g, 0, 0)),
        scratch_shapes=[pltpu.VMEM((slab_rows, N), matmul_dtype)],
        compiler_params=pltpu.CompilerParams(
            dimension_semantics=("parallel",),
            vmem_limit_bytes=vmem_bytes),
        cost_estimate=pl.CostEstimate(
            flops=int(flops), transcendentals=int(transcendentals),
            bytes_accessed=int(bytes_accessed)),
    )(x_pack, w1_mat, w2_mat, pcol, coords)

    if Bt > 1:
        return (out_flat.reshape(G, Cout, Bt, HW)
                .transpose(0, 2, 1, 3).reshape(B, Cout, H, W))
    return out_flat.reshape(B, Cout, H, W)


# ---------------------------------------------------------------------------
# Pure-JAX reference (for correctness check), NCHW like the PyTorch module.
# ---------------------------------------------------------------------------
def ref_forward(x, params, *, padding):
    dn = ("NCHW", "OIHW", "NCHW")

    def conv(x, w, b, pad):
        y = jax.lax.conv_general_dilated(x, w, (1, 1), [(pad, pad), (pad, pad)],
                                         dimension_numbers=dn)
        return y + b.reshape(1, -1, 1, 1)

    def ln(x, g, b):
        mu = x.mean(1, keepdims=True)
        var = ((x - mu) ** 2).mean(1, keepdims=True)
        return ((x - mu) / jnp.sqrt(var + 1e-5) * g.reshape(1, -1, 1, 1)
                + b.reshape(1, -1, 1, 1))

    gelu = lambda v: 0.5 * v * (1.0 + jax.lax.erf(v / jnp.sqrt(2.0)))

    if "w_res" in params:
        Cout, Cin = params["w_res"].shape
        r = conv(x, params["w_res"].reshape(Cout, Cin, 1, 1), params["b_res"], 0)
    else:
        r = x
    h = gelu(ln(conv(x, params["w1"], params["b1"], padding),
                params["g1"], params["be1"]))
    h = ln(conv(h, params["w2"], params["b2"], padding),
           params["g2"], params["be2"])
    return gelu(h + r)


# ---------------------------------------------------------------------------
def make_params(key, Cin, Cout, K):
    ks = jax.random.split(key, 10)
    p = {
        "w1": 0.1 * jax.random.normal(ks[0], (Cout, Cin, K, K), jnp.float32),
        "b1": 0.1 * jax.random.normal(ks[1], (Cout,), jnp.float32),
        "g1": 1.0 + 0.1 * jax.random.normal(ks[2], (Cout,), jnp.float32),
        "be1": 0.1 * jax.random.normal(ks[3], (Cout,), jnp.float32),
        "w2": 0.1 * jax.random.normal(ks[4], (Cout, Cout, K, K), jnp.float32),
        "b2": 0.1 * jax.random.normal(ks[5], (Cout,), jnp.float32),
        "g2": 1.0 + 0.1 * jax.random.normal(ks[6], (Cout,), jnp.float32),
        "be2": 0.1 * jax.random.normal(ks[7], (Cout,), jnp.float32),
    }
    if Cin != Cout:   # nn.Conv2d(Cin, Cout, kernel_size=1) residual
        p["w_res"] = 0.1 * jax.random.normal(ks[8], (Cout, Cin), jnp.float32)
        p["b_res"] = 0.1 * jax.random.normal(ks[9], (Cout,), jnp.float32)
    return p


if __name__ == "__main__":
    # Module config: ResConvBlock(in_channels=4, out_channels=8, kernel_size=3,
    #                             stride=1, padding=1)
    B, Cin, H, W = 2, 4, 16, 16
    Cout, K, stride, pad = 8, 3, 1, 1

    key = jax.random.PRNGKey(0)
    kx, kp, kp2 = jax.random.split(key, 3)
    x = jax.random.normal(kx, (B, Cin, H, W), jnp.float32)   # NCHW, PyTorch layout
    params = make_params(kp, Cin, Cout, K)

    # 1) projection-residual case (Cin != Cout), f32 matmuls: exact semantics.
    out = res_conv_block(x, params, kernel_size=K, stride=stride, padding=pad)
    out = jax.block_until_ready(out)
    ref = ref_forward(x, params, padding=pad)
    assert out.shape == (B, Cout, H, W)
    err = float(jnp.abs(out - ref).max())
    assert jnp.allclose(out, ref, atol=1e-4, rtol=1e-4), f"max err {err}"

    # 2) identity-residual case (Cin == Cout): residual matmul is skipped.
    x_id = jax.random.normal(kx, (B, Cout, H, W), jnp.float32)
    params_id = make_params(kp2, Cout, Cout, K)
    out_id = jax.block_until_ready(
        res_conv_block(x_id, params_id, kernel_size=K, stride=stride, padding=pad))
    ref_id = ref_forward(x_id, params_id, padding=pad)
    err_id = float(jnp.abs(out_id - ref_id).max())
    assert jnp.allclose(out_id, ref_id, atol=1e-4, rtol=1e-4), f"max err {err_id}"

    # 3) bf16 matmul path smoke test (slab/weights bf16, LN/GELU/residual f32).
    out_bf = jax.block_until_ready(
        res_conv_block(x, params, kernel_size=K, stride=stride, padding=pad,
                       matmul_dtype=jnp.bfloat16))
    err_bf = float(jnp.abs(out_bf - ref).max())
    assert jnp.allclose(out_bf, ref, atol=1.5e-1, rtol=1e-1), f"bf16 max err {err_bf}"

    print("KERNEL_OK")
</pallas_src>

<mosaic_0001>
module attributes {stable_mosaic.version = 11 : i64} {
  func.func @probe(%arg0: memref<8x128xf32, #tpu.memory_space<vmem>>, %arg1: memref<8x128xf32, #tpu.memory_space<vmem>>) attributes {dimension_semantics = [], scalar_prefetch = 0 : i64, scratch_operands = 0 : i64, tpu.core_type = #tpu.core_type<tc>} {
    %c0 = arith.constant 0 : index
    %c0_0 = arith.constant 0 : index
    %0 = vector.load %arg0[%c0, %c0_0] : memref<8x128xf32, #tpu.memory_space<vmem>>, vector<8x128xf32>
    %c1_i32 = arith.constant 1 : i32
    %1 = tpu.dynamic_rotate %0 by %c1_i32 dim 1 : vector<8x128xf32>, i32 -> vector<8x128xf32>
    %c0_1 = arith.constant 0 : index
    %c0_2 = arith.constant 0 : index
    %2 = vector.load %arg1[%c0_1, %c0_2] : memref<8x128xf32, #tpu.memory_space<vmem>>, vector<8x128xf32>
    tpu.vector_store %arg1[%c0_1, %c0_2], %1 {strides = array<i32>} : memref<8x128xf32, #tpu.memory_space<vmem>>, vector<8x128xf32>,
    return
  }
}

</mosaic_0001>

<bundles_post_ra>
// kernel: tpu_custom_call.1
= control target key start
LH: loop header
LB: loop body
LE: loop exit
PB: predicated region body
PF: predicated region fallthrough
CT: control target
= control target key end

     0   :  { %6 = vsyncpa [#allocation3], 0  ;;  %s128_s0 = inlined_call_operand.hbm [shape: f32[8,128], index: 0, kind: input, shape index: {}]   ;;  %s129_s1 = inlined_call_operand.hbm [shape: f32[8,128], index: 1, kind: output, shape index: {}]  }
   0x1   :  { %7 = vsyncpa [#allocation4], 0  ;;  %s91_s6 = smov [#allocation2]   ;;  %s43_s10 = scalar_lea.hbm %s128_s0, 128 }
   0x2   :  { %s14_s7 = sshll.u32 %s91_s6, 4  ;;  %p44_p0 = scmp.ne.s32.totalorder %s128_s0, %s43_s10  ;;  %s15_s7 = int_to_ptr.vmem [resolvable:$true] %s14_s7 }
   0x3   :  { %p47_p1 = scmp.lt.u32.totalorder %s43_s10, %s128_s0 }
   0x5   :  { %p49_p2 = pnand %p47_p1, %p44_p0 }
   0x7   :  { %52 = shalt.err (!%p49_p2)
}
   0x8   :  { %s53_s15 = scalar_lea.vmem %s15_s7, 128  ;;  %p58_p4 = scmp.lt.s32.totalorder %s15_s7, %s15_s7 }
   0x9   :  { %p54_p3 = scmp.ne.s32.totalorder %s15_s7, %s53_s15  ;;  %p59_p5 = scmp.lt.s32.totalorder %s53_s15, %s53_s15 }
   0xb   :  { %p60_p6 = por %p59_p5, %p58_p4 }
   0xd   :  { %p61_p7 = pnand %p60_p6, %p54_p3 }
   0xf   :  { %64 = shalt.err (!%p61_p7)
}
  0x10   :  { %17 = dma.hbm_to_vmem [thread:$0]  %s128_s0, 128, %s15_s7, [#allocation3]  }
  0x11   :  { %87 = dma.done.wait [#allocation3], 128  }
  0x12   :  { %88 = vsyncadd [#allocation3], 4294967168  ;;  %v21_v0 = vld [vmem:[#allocation2] sm:$0xff]  ;;  %s92_s18 = smov 1   ;;  %s93_s19 = smov [#allocation5]  }
  0x13   :  { %22 = vrot.lane.b32.xlu0 %v21_v0, %s92_s18  ;;  %s31_s20 = sshll.u32 %s93_s19, 4  ;;  %s32_s20 = int_to_ptr.vmem [resolvable:$true] %s31_s20 }
  0x14   :  { %s65_s21 = scalar_lea.vmem %s32_s20, 128  ;;  %p70_p9 = scmp.lt.s32.totalorder %s32_s20, %s32_s20 }
  0x15   :  { %p66_p8 = scmp.ne.s32.totalorder %s32_s20, %s65_s21  ;;  %p71_p10 = scmp.lt.s32.totalorder %s65_s21, %s65_s21 }
  0x17   :  { %p72_p11 = por %p71_p10, %p70_p9 }
  0x19   :  { %p73_p12 = pnand %p72_p11, %p66_p8 }
  0x85   :  { %v23_v1 = vpop.permute.xlu0 %22 }
  0x86   :  { %24 = vst [vmem:[#allocation5] sm:$0xff] %v23_v1 }
  0x87   :  { %76 = shalt.err (!%p73_p12)
}
  0x88   :  { %s77_s0 = scalar_lea.hbm %s129_s1, 128 }
  0x89   :  { %p78_p13 = scmp.ne.s32.totalorder %s129_s1, %s77_s0  ;;  %p81_p0 = scmp.lt.u32.totalorder %s77_s0, %s129_s1 }
  0x8b   :  { %p83_p1 = pnand %p81_p0, %p78_p13 }
  0x8d   :  { %86 = shalt.err (!%p83_p1)
}
  0x8e   :  { %34 = dma.vmem_to_hbm [thread:$0]  %s32_s20, 128, %s129_s1, [#allocation4]  }
  0x8f   :  { %89 = dma.done.wait [#allocation4], 128  }
  0x90   :  { %90 = vsyncadd [#allocation4], 4294967168 }
  0x91   :  { %38 = vsyncpa [#allocation3], 1 }
  0x92   :  { %39 = vsyncpa [#allocation4], 1 }

</bundles_post_ra>
